<compile_context>
chip_gen: v5e
topology: v5e:2x2
jax: 0.10.0
libtpu: 0.0.40
codegen_flags: <defaults>
</compile_context>

<pallas_src>
import jax
import jax.numpy as jnp
from jax import lax
from jax.experimental import pallas as pl
from jax.experimental.pallas import tpu as pltpu


def _round_up(n, m):
    return ((n + m - 1) // m) * m


# ----------------------------------------------------------------------------
# Per-lane weight-vector construction (wrapper side, once per call).
#
# In the interleaved layout, sample s occupies lanes (2s, 2s+1).  A plane
# holding the output-feature pair (j0, j1) is computed as
#     plane = sum_q [ in_plane_q * self_vec + other(in_plane_q) * other_vec ] + bias_vec
# where the per-lane vectors absorb the even/odd parity:
#     self_vec : even lane -> W[k0, j0], odd lane -> W[k1, j1]
#     other_vec: even lane -> W[k1, j0], odd lane -> W[k0, j1]
#     bias_vec : even lane -> b[j0],     odd lane -> b[j1]
# ----------------------------------------------------------------------------
def _pair_vec(v_even, v_odd):
    return jnp.tile(jnp.stack([v_even, v_odd]), 64)          # (128,)


def _layer_lane_rows(w, b):
    """w: (in_dim, out_dim), b: (out_dim,); both dims even."""
    rows = []
    in_dim, out_dim = w.shape
    for p in range(out_dim // 2):
        j0, j1 = 2 * p, 2 * p + 1
        for q in range(in_dim // 2):
            k0, k1 = 2 * q, 2 * q + 1
            rows.append(_pair_vec(w[k0, j0], w[k1, j1]))      # * in_plane   (self)
            rows.append(_pair_vec(w[k1, j0], w[k0, j1]))      # * other(in)  (other)
        rows.append(_pair_vec(b[j0], b[j1]))                  # + bias
    return rows


_LC_ROWS = 24   # 21 used rows (6 enc1 + 10 mid + 5 dec2), padded to a multiple of 8.


# ----------------------------------------------------------------------------
# Kernel: one (tile_rows, 128) batch tile, features interleaved along lanes.
# ----------------------------------------------------------------------------
def _autoencoder_kernel(lc_ref, x_ref, out_ref):
    x = x_ref[...]                                            # (tr, 128) f32

    lane = lax.broadcasted_iota(jnp.int32, (1, 128), 1)
    is_even = (lane % 2) == 0                                 # (1, 128), broadcasts over rows

    def other(t):
        # Swap the two lanes of every (even, odd) pair:
        #   other[2s] = t[2s + 1],  other[2s + 1] = t[2s].
        # (jnp.roll semantics: roll(t, k)[i] == t[(i - k) % 128].)
        return jnp.where(is_even,
                         pltpu.roll(t, 127, axis=1),          # t[i + 1]
                         pltpu.roll(t, 1, axis=1))            # t[i - 1]

    def c(row):                                               # (1, 128) lane constant
        return lc_ref[row:row + 1, :]

    x_o = other(x)

    # encoder Linear(2, 4) + ReLU  -- planes hold hidden features (0,1) and (2,3)
    h01 = jnp.maximum(x * c(0) + x_o * c(1) + c(2), 0.0)
    h23 = jnp.maximum(x * c(3) + x_o * c(4) + c(5), 0.0)
    h01_o = other(h01)
    h23_o = other(h23)

    # folded middle Linear(4, 4) (= enc Linear(4,2) o dec Linear(2,4)) + ReLU
    d01 = jnp.maximum(h01 * c(6) + h01_o * c(7)
                      + h23 * c(8) + h23_o * c(9) + c(10), 0.0)
    d23 = jnp.maximum(h01 * c(11) + h01_o * c(12)
                      + h23 * c(13) + h23_o * c(14) + c(15), 0.0)
    d01_o = other(d01)
    d23_o = other(d23)

    # decoder Linear(4, 2) -- output lanes are already the [B, 2] row-major interleave
    out_ref[...] = (d01 * c(16) + d01_o * c(17)
                    + d23 * c(18) + d23_o * c(19) + c(20))


# ----------------------------------------------------------------------------
# Wrapper
# ----------------------------------------------------------------------------
def autoencoder_forward(x, params, *, tile_rows=2048, min_pallas_batch=4096):
    """x: [B, 2] float32 -> [B, 2] float32 (same math as the nn.Module)."""
    B = x.shape[0]
    if B < min_pallas_batch:
        # Small batches are launch-overhead dominated; plain XLA is faster.
        return reference_forward(x, params)

    hp = lax.Precision.HIGHEST
    we1 = params["we1"]                        # (2, 4)
    be1 = params["be1"].reshape(-1)            # (4,)
    wd2 = params["wd2"]                        # (4, 2)
    bd2 = params["bd2"].reshape(-1)            # (2,)
    # Fold the two middle linears (no nonlinearity between them).
    w_mid = jnp.dot(params["we2"], params["wd1"], precision=hp)                      # (4, 4)
    b_mid = (jnp.dot(params["be2"], params["wd1"], precision=hp)
             + params["bd1"]).reshape(-1)                                            # (4,)

    rows = (_layer_lane_rows(we1, be1)
            + _layer_lane_rows(w_mid, b_mid)
            + _layer_lane_rows(wd2, bd2))
    lane_consts = jnp.stack(rows).astype(jnp.float32)          # (21, 128)
    lane_consts = jnp.pad(lane_consts, ((0, _LC_ROWS - lane_consts.shape[0]), (0, 0)))

    # Rows of 64 samples each: [B, 2] row-major is a pure reshape of [R, 128]
    # with the two features interleaved along lanes.
    R = pl.cdiv(B * 2, 128)
    tr = min(_round_up(R, 8), max(8, (tile_rows // 8) * 8))
    if R >= 16 and _round_up(R, tr) == tr:
        # Prefer >= 2 grid steps so v7x's two TensorCores both get work.
        tr = _round_up(pl.cdiv(R, 2), 8)
    Rp = _round_up(R, tr)
    Bp = Rp * 64

    xv = x if x.dtype == jnp.float32 else x.astype(jnp.float32)
    if Bp != B:
        xv = jnp.pad(xv, ((0, Bp - B), (0, 0)))   # only when B % (64 * tr) != 0
    xv = xv.reshape(Rp, 128)                      # free reshape (row-major view)

    grid = (Rp // tr,)
    cost = pl.CostEstimate(flops=82 * Bp, transcendentals=0,
                           bytes_accessed=16 * Bp + lane_consts.size * 4)

    yv = pl.pallas_call(
        _autoencoder_kernel,
        out_shape=jax.ShapeDtypeStruct((Rp, 128), jnp.float32),
        grid=grid,
        in_specs=[
            pl.BlockSpec((_LC_ROWS, 128), lambda i: (0, 0)),   # resident lane constants
            pl.BlockSpec((tr, 128), lambda i: (i, 0)),
        ],
        out_specs=pl.BlockSpec((tr, 128), lambda i: (i, 0)),
        compiler_params=pltpu.CompilerParams(
            dimension_semantics=("parallel",),
            vmem_limit_bytes=48 * 1024 * 1024),
        cost_estimate=cost,
    )(lane_consts, xv)

    y = yv.reshape(Bp, 2)                         # free reshape back to row-major [Bp, 2]
    return y if Bp == B else y[:B]


def init_params(key):
    """Parameter init matching the nn.Module shapes.

    PyTorch Linear(in, out) has weight (out, in); we store the transpose
    (in, out) so the math is x @ W + b.  Biases are kept (1, out)."""
    ks = jax.random.split(key, 8)

    def lin(kw, kb, fan_in, fan_out):
        bound = 1.0 / jnp.sqrt(fan_in)
        w = jax.random.uniform(kw, (fan_in, fan_out), jnp.float32, -bound, bound)
        b = jax.random.uniform(kb, (1, fan_out), jnp.float32, -bound, bound)
        return w, b

    we1, be1 = lin(ks[0], ks[1], 2, 4)   # encoder Linear(2, 4)
    we2, be2 = lin(ks[2], ks[3], 4, 2)   # encoder Linear(4, 2)
    wd1, bd1 = lin(ks[4], ks[5], 2, 4)   # decoder Linear(2, 4)
    wd2, bd2 = lin(ks[6], ks[7], 4, 2)   # decoder Linear(4, 2)
    return dict(we1=we1, be1=be1, we2=we2, be2=be2,
                wd1=wd1, bd1=bd1, wd2=wd2, bd2=bd2)


def reference_forward(x, p):
    """Plain-JAX reference (unfolded, f32-exact matmuls, matches the PyTorch module)."""
    hp = lax.Precision.HIGHEST
    h = jnp.maximum(jnp.dot(x, p["we1"], precision=hp) + p["be1"], 0.0)
    z = jnp.dot(h, p["we2"], precision=hp) + p["be2"]
    d = jnp.maximum(jnp.dot(z, p["wd1"], precision=hp) + p["bd1"], 0.0)
    return jnp.dot(d, p["wd2"], precision=hp) + p["bd2"]


if __name__ == "__main__":
    key = jax.random.PRNGKey(0)
    k_params, k_small, k_big = jax.random.split(key, 3)
    params = init_params(k_params)

    # 1) Small batch (8, 2) forced through the Pallas kernel
    #    (single grid step; batch padded up inside the wrapper).
    x_small = jax.random.normal(k_small, (8, 2), jnp.float32)
    y_small = autoencoder_forward(x_small, params, min_pallas_batch=0)
    jax.block_until_ready(y_small)
    y_small_ref = reference_forward(x_small, params)
    assert y_small.shape == (8, 2)
    assert jnp.allclose(y_small, y_small_ref, atol=1e-5, rtol=1e-4), "mismatch (B=8)"

    # 2) Batch not divisible by 64 with a small tile so the kernel runs a
    #    multi-step grid (exercises padding, slicing, resident lane constants).
    x_big = jax.random.normal(k_big, (4133, 2), jnp.float32)
    y_big = autoencoder_forward(x_big, params, min_pallas_batch=0, tile_rows=32)
    jax.block_until_ready(y_big)
    y_big_ref = reference_forward(x_big, params)
    assert y_big.shape == (4133, 2)
    assert jnp.allclose(y_big, y_big_ref, atol=1e-5, rtol=1e-4), "mismatch (B=4133)"

    # 3) Default small-batch path falls back to plain XLA.
    y_fb = autoencoder_forward(x_small, params)
    jax.block_until_ready(y_fb)
    assert jnp.allclose(y_fb, y_small_ref, atol=1e-6, rtol=1e-6), "fallback mismatch"

    print("KERNEL_OK")
</pallas_src>

<mosaic_0001>
module attributes {stable_mosaic.version = 11 : i64} {
  func.func @_autoencoder_kernel(%arg0: i32, %arg1: memref<24x128xf32, #tpu.memory_space<vmem>>, %arg2: memref<8x128xf32, #tpu.memory_space<vmem>>, %arg3: memref<8x128xf32, #tpu.memory_space<vmem>>) attributes {dimension_semantics = [#tpu.dimension_semantics<parallel>], iteration_bounds = array<i64: 1>, scalar_prefetch = 0 : i64, scratch_operands = 0 : i64, tpu.core_type = #tpu.core_type<tc>, window_params = [{pipeline_mode = #tpu.pipeline_mode<synchronous>, transform_indices = @transform_0, window_bounds = array<i64: 24, 128>}, {transform_indices = @transform_1, window_bounds = array<i64: 8, 128>}, {transform_indices = @transform_2, window_bounds = array<i64: 8, 128>}]} {
    %c0 = arith.constant 0 : index
    %c0_0 = arith.constant 0 : index
    %0 = vector.load %arg2[%c0, %c0_0] : memref<8x128xf32, #tpu.memory_space<vmem>>, vector<8x128xf32>
    %1 = tpu.iota {dimensions = array<i32: 1>} : vector<1x128xi32>
    %c2_i32 = arith.constant 2 : i32
    %c0_i32 = arith.constant 0 : i32
    %2 = arith.cmpi eq, %c2_i32, %c0_i32 : i32
    %c1_i32 = arith.constant 1 : i32
    %3 = arith.select %2, %c1_i32, %c2_i32 : i32
    %4 = vector.broadcast %3 : i32 to vector<1x128xi32>
    %5 = arith.remsi %1, %4 : vector<1x128xi32>
    %c0_i32_1 = arith.constant 0 : i32
    %6 = vector.broadcast %c0_i32_1 : i32 to vector<1x128xi32>
    %7 = arith.cmpi ne, %5, %6 : vector<1x128xi32>
    %c0_i32_2 = arith.constant 0 : i32
    %8 = vector.broadcast %c0_i32_2 : i32 to vector<1x128xi32>
    %9 = arith.cmpi slt, %5, %8 : vector<1x128xi32>
    %c0_i32_3 = arith.constant 0 : i32
    %10 = arith.cmpi slt, %3, %c0_i32_3 : i32
    %11 = vector.broadcast %10 : i1 to vector<1x128xi1>
    %12 = vector.broadcast %11 : vector<1x128xi1> to vector<1x128xi1>
    %13 = arith.xori %9, %12 : vector<1x128xi1>
    %14 = arith.andi %13, %7 : vector<1x128xi1>
    %15 = vector.broadcast %3 : i32 to vector<1x128xi32>
    %16 = arith.addi %5, %15 : vector<1x128xi32>
    %17 = arith.select %14, %16, %5 : vector<1x128xi1>, vector<1x128xi32>
    %c0_i32_4 = arith.constant 0 : i32
    %18 = vector.broadcast %c0_i32_4 : i32 to vector<1x128xi32>
    %19 = arith.cmpi eq, %17, %18 : vector<1x128xi32>
    %c127_i32 = arith.constant 127 : i32
    %20 = tpu.dynamic_rotate %0 by %c127_i32 dim 1 : vector<8x128xf32>, i32 -> vector<8x128xf32>
    %c1_i32_5 = arith.constant 1 : i32
    %21 = tpu.dynamic_rotate %0 by %c1_i32_5 dim 1 : vector<8x128xf32>, i32 -> vector<8x128xf32>
    %22 = vector.shape_cast %19 : vector<1x128xi1> to vector<1x128xi1>
    %23 = vector.broadcast %22 : vector<1x128xi1> to vector<8x128xi1>
    %24 = arith.select %23, %20, %21 : vector<8x128xi1>, vector<8x128xf32>
    %c0_6 = arith.constant 0 : index
    %c0_7 = arith.constant 0 : index
    %25 = vector.load %arg1[%c0_6, %c0_7] : memref<24x128xf32, #tpu.memory_space<vmem>>, vector<1x128xf32>
    %26 = vector.broadcast %25 : vector<1x128xf32> to vector<8x128xf32>
    %27 = arith.mulf %0, %26 : vector<8x128xf32>
    %c1 = arith.constant 1 : index
    %c0_8 = arith.constant 0 : index
    %28 = vector.load %arg1[%c1, %c0_8] : memref<24x128xf32, #tpu.memory_space<vmem>>, vector<1x128xf32>
    %29 = vector.broadcast %28 : vector<1x128xf32> to vector<8x128xf32>
    %30 = arith.mulf %24, %29 : vector<8x128xf32>
    %31 = arith.addf %27, %30 : vector<8x128xf32>
    %c2 = arith.constant 2 : index
    %c0_9 = arith.constant 0 : index
    %32 = vector.load %arg1[%c2, %c0_9] : memref<24x128xf32, #tpu.memory_space<vmem>>, vector<1x128xf32>
    %33 = vector.broadcast %32 : vector<1x128xf32> to vector<8x128xf32>
    %34 = arith.addf %31, %33 : vector<8x128xf32>
    %cst = arith.constant 0.000000e+00 : f32
    %35 = vector.broadcast %cst : f32 to vector<8x128xf32>
    %36 = arith.maximumf %34, %35 : vector<8x128xf32>
    %c3 = arith.constant 3 : index
    %c0_10 = arith.constant 0 : index
    %37 = vector.load %arg1[%c3, %c0_10] : memref<24x128xf32, #tpu.memory_space<vmem>>, vector<1x128xf32>
    %38 = vector.broadcast %37 : vector<1x128xf32> to vector<8x128xf32>
    %39 = arith.mulf %0, %38 : vector<8x128xf32>
    %c4 = arith.constant 4 : index
    %c0_11 = arith.constant 0 : index
    %40 = vector.load %arg1[%c4, %c0_11] : memref<24x128xf32, #tpu.memory_space<vmem>>, vector<1x128xf32>
    %41 = vector.broadcast %40 : vector<1x128xf32> to vector<8x128xf32>
    %42 = arith.mulf %24, %41 : vector<8x128xf32>
    %43 = arith.addf %39, %42 : vector<8x128xf32>
    %c5 = arith.constant 5 : index
    %c0_12 = arith.constant 0 : index
    %44 = vector.load %arg1[%c5, %c0_12] : memref<24x128xf32, #tpu.memory_space<vmem>>, vector<1x128xf32>
    %45 = vector.broadcast %44 : vector<1x128xf32> to vector<8x128xf32>
    %46 = arith.addf %43, %45 : vector<8x128xf32>
    %cst_13 = arith.constant 0.000000e+00 : f32
    %47 = vector.broadcast %cst_13 : f32 to vector<8x128xf32>
    %48 = arith.maximumf %46, %47 : vector<8x128xf32>
    %c127_i32_14 = arith.constant 127 : i32
    %49 = tpu.dynamic_rotate %36 by %c127_i32_14 dim 1 : vector<8x128xf32>, i32 -> vector<8x128xf32>
    %c1_i32_15 = arith.constant 1 : i32
    %50 = tpu.dynamic_rotate %36 by %c1_i32_15 dim 1 : vector<8x128xf32>, i32 -> vector<8x128xf32>
    %51 = vector.shape_cast %19 : vector<1x128xi1> to vector<1x128xi1>
    %52 = vector.broadcast %51 : vector<1x128xi1> to vector<8x128xi1>
    %53 = arith.select %52, %49, %50 : vector<8x128xi1>, vector<8x128xf32>
    %c127_i32_16 = arith.constant 127 : i32
    %54 = tpu.dynamic_rotate %48 by %c127_i32_16 dim 1 : vector<8x128xf32>, i32 -> vector<8x128xf32>
    %c1_i32_17 = arith.constant 1 : i32
    %55 = tpu.dynamic_rotate %48 by %c1_i32_17 dim 1 : vector<8x128xf32>, i32 -> vector<8x128xf32>
    %56 = vector.shape_cast %19 : vector<1x128xi1> to vector<1x128xi1>
    %57 = vector.broadcast %56 : vector<1x128xi1> to vector<8x128xi1>
    %58 = arith.select %57, %54, %55 : vector<8x128xi1>, vector<8x128xf32>
    %c6 = arith.constant 6 : index
    %c0_18 = arith.constant 0 : index
    %59 = vector.load %arg1[%c6, %c0_18] : memref<24x128xf32, #tpu.memory_space<vmem>>, vector<1x128xf32>
    %60 = vector.broadcast %59 : vector<1x128xf32> to vector<8x128xf32>
    %61 = arith.mulf %36, %60 : vector<8x128xf32>
    %c7 = arith.constant 7 : index
    %c0_19 = arith.constant 0 : index
    %62 = vector.load %arg1[%c7, %c0_19] : memref<24x128xf32, #tpu.memory_space<vmem>>, vector<1x128xf32>
    %63 = vector.broadcast %62 : vector<1x128xf32> to vector<8x128xf32>
    %64 = arith.mulf %53, %63 : vector<8x128xf32>
    %65 = arith.addf %61, %64 : vector<8x128xf32>
    %c8 = arith.constant 8 : index
    %c0_20 = arith.constant 0 : index
    %66 = vector.load %arg1[%c8, %c0_20] : memref<24x128xf32, #tpu.memory_space<vmem>>, vector<1x128xf32>
    %67 = vector.broadcast %66 : vector<1x128xf32> to vector<8x128xf32>
    %68 = arith.mulf %48, %67 : vector<8x128xf32>
    %69 = arith.addf %65, %68 : vector<8x128xf32>
    %c9 = arith.constant 9 : index
    %c0_21 = arith.constant 0 : index
    %70 = vector.load %arg1[%c9, %c0_21] : memref<24x128xf32, #tpu.memory_space<vmem>>, vector<1x128xf32>
    %71 = vector.broadcast %70 : vector<1x128xf32> to vector<8x128xf32>
    %72 = arith.mulf %58, %71 : vector<8x128xf32>
    %73 = arith.addf %69, %72 : vector<8x128xf32>
    %c10 = arith.constant 10 : index
    %c0_22 = arith.constant 0 : index
    %74 = vector.load %arg1[%c10, %c0_22] : memref<24x128xf32, #tpu.memory_space<vmem>>, vector<1x128xf32>
    %75 = vector.broadcast %74 : vector<1x128xf32> to vector<8x128xf32>
    %76 = arith.addf %73, %75 : vector<8x128xf32>
    %cst_23 = arith.constant 0.000000e+00 : f32
    %77 = vector.broadcast %cst_23 : f32 to vector<8x128xf32>
    %78 = arith.maximumf %76, %77 : vector<8x128xf32>
    %c11 = arith.constant 11 : index
    %c0_24 = arith.constant 0 : index
    %79 = vector.load %arg1[%c11, %c0_24] : memref<24x128xf32, #tpu.memory_space<vmem>>, vector<1x128xf32>
    %80 = vector.broadcast %79 : vector<1x128xf32> to vector<8x128xf32>
    %81 = arith.mulf %36, %80 : vector<8x128xf32>
    %c12 = arith.constant 12 : index
    %c0_25 = arith.constant 0 : index
    %82 = vector.load %arg1[%c12, %c0_25] : memref<24x128xf32, #tpu.memory_space<vmem>>, vector<1x128xf32>
    %83 = vector.broadcast %82 : vector<1x128xf32> to vector<8x128xf32>
    %84 = arith.mulf %53, %83 : vector<8x128xf32>
    %85 = arith.addf %81, %84 : vector<8x128xf32>
    %c13 = arith.constant 13 : index
    %c0_26 = arith.constant 0 : index
    %86 = vector.load %arg1[%c13, %c0_26] : memref<24x128xf32, #tpu.memory_space<vmem>>, vector<1x128xf32>
    %87 = vector.broadcast %86 : vector<1x128xf32> to vector<8x128xf32>
    %88 = arith.mulf %48, %87 : vector<8x128xf32>
    %89 = arith.addf %85, %88 : vector<8x128xf32>
    %c14 = arith.constant 14 : index
    %c0_27 = arith.constant 0 : index
    %90 = vector.load %arg1[%c14, %c0_27] : memref<24x128xf32, #tpu.memory_space<vmem>>, vector<1x128xf32>
    %91 = vector.broadcast %90 : vector<1x128xf32> to vector<8x128xf32>
    %92 = arith.mulf %58, %91 : vector<8x128xf32>
    %93 = arith.addf %89, %92 : vector<8x128xf32>
    %c15 = arith.constant 15 : index
    %c0_28 = arith.constant 0 : index
    %94 = vector.load %arg1[%c15, %c0_28] : memref<24x128xf32, #tpu.memory_space<vmem>>, vector<1x128xf32>
    %95 = vector.broadcast %94 : vector<1x128xf32> to vector<8x128xf32>
    %96 = arith.addf %93, %95 : vector<8x128xf32>
    %cst_29 = arith.constant 0.000000e+00 : f32
    %97 = vector.broadcast %cst_29 : f32 to vector<8x128xf32>
    %98 = arith.maximumf %96, %97 : vector<8x128xf32>
    %c127_i32_30 = arith.constant 127 : i32
    %99 = tpu.dynamic_rotate %78 by %c127_i32_30 dim 1 : vector<8x128xf32>, i32 -> vector<8x128xf32>
    %c1_i32_31 = arith.constant 1 : i32
    %100 = tpu.dynamic_rotate %78 by %c1_i32_31 dim 1 : vector<8x128xf32>, i32 -> vector<8x128xf32>
    %101 = vector.shape_cast %19 : vector<1x128xi1> to vector<1x128xi1>
    %102 = vector.broadcast %101 : vector<1x128xi1> to vector<8x128xi1>
    %103 = arith.select %102, %99, %100 : vector<8x128xi1>, vector<8x128xf32>
    %c127_i32_32 = arith.constant 127 : i32
    %104 = tpu.dynamic_rotate %98 by %c127_i32_32 dim 1 : vector<8x128xf32>, i32 -> vector<8x128xf32>
    %c1_i32_33 = arith.constant 1 : i32
    %105 = tpu.dynamic_rotate %98 by %c1_i32_33 dim 1 : vector<8x128xf32>, i32 -> vector<8x128xf32>
    %106 = vector.shape_cast %19 : vector<1x128xi1> to vector<1x128xi1>
    %107 = vector.broadcast %106 : vector<1x128xi1> to vector<8x128xi1>
    %108 = arith.select %107, %104, %105 : vector<8x128xi1>, vector<8x128xf32>
    %c16 = arith.constant 16 : index
    %c0_34 = arith.constant 0 : index
    %109 = vector.load %arg1[%c16, %c0_34] : memref<24x128xf32, #tpu.memory_space<vmem>>, vector<1x128xf32>
    %110 = vector.broadcast %109 : vector<1x128xf32> to vector<8x128xf32>
    %111 = arith.mulf %78, %110 : vector<8x128xf32>
    %c17 = arith.constant 17 : index
    %c0_35 = arith.constant 0 : index
    %112 = vector.load %arg1[%c17, %c0_35] : memref<24x128xf32, #tpu.memory_space<vmem>>, vector<1x128xf32>
    %113 = vector.broadcast %112 : vector<1x128xf32> to vector<8x128xf32>
    %114 = arith.mulf %103, %113 : vector<8x128xf32>
    %115 = arith.addf %111, %114 : vector<8x128xf32>
    %c18 = arith.constant 18 : index
    %c0_36 = arith.constant 0 : index
    %116 = vector.load %arg1[%c18, %c0_36] : memref<24x128xf32, #tpu.memory_space<vmem>>, vector<1x128xf32>
    %117 = vector.broadcast %116 : vector<1x128xf32> to vector<8x128xf32>
    %118 = arith.mulf %98, %117 : vector<8x128xf32>
    %119 = arith.addf %115, %118 : vector<8x128xf32>
    %c19 = arith.constant 19 : index
    %c0_37 = arith.constant 0 : index
    %120 = vector.load %arg1[%c19, %c0_37] : memref<24x128xf32, #tpu.memory_space<vmem>>, vector<1x128xf32>
    %121 = vector.broadcast %120 : vector<1x128xf32> to vector<8x128xf32>
    %122 = arith.mulf %108, %121 : vector<8x128xf32>
    %123 = arith.addf %119, %122 : vector<8x128xf32>
    %c20 = arith.constant 20 : index
    %c0_38 = arith.constant 0 : index
    %124 = vector.load %arg1[%c20, %c0_38] : memref<24x128xf32, #tpu.memory_space<vmem>>, vector<1x128xf32>
    %125 = vector.broadcast %124 : vector<1x128xf32> to vector<8x128xf32>
    %126 = arith.addf %123, %125 : vector<8x128xf32>
    %c0_39 = arith.constant 0 : index
    %c0_40 = arith.constant 0 : index
    %127 = vector.load %arg3[%c0_39, %c0_40] : memref<8x128xf32, #tpu.memory_space<vmem>>, vector<8x128xf32>
    tpu.vector_store %arg3[%c0_39, %c0_40], %126 {strides = array<i32>} : memref<8x128xf32, #tpu.memory_space<vmem>>, vector<8x128xf32>,
    return
  }
  func.func @transform_0(%arg0: i32) -> (i32, i32) {
    %c0_i32 = arith.constant 0 : i32
    %c0_i32_0 = arith.constant 0 : i32
    %c0_i32_1 = arith.constant 0 : i32
    return %c0_i32, %c0_i32_0 : i32, i32
  }
  func.func @transform_1(%arg0: i32) -> (i32, i32) {
    %c0_i32 = arith.constant 0 : i32
    %c0_i32_0 = arith.constant 0 : i32
    return %arg0, %c0_i32 : i32, i32
  }
  func.func @transform_2(%arg0: i32) -> (i32, i32) {
    %c0_i32 = arith.constant 0 : i32
    %c0_i32_0 = arith.constant 0 : i32
    return %arg0, %c0_i32 : i32, i32
  }
}

</mosaic_0001>

<bundles_post_ra>
// kernel: tpu_custom_call.1
= control target key start
LH: loop header
LB: loop body
LE: loop exit
PB: predicated region body
PF: predicated region fallthrough
CT: control target
= control target key end

     0   :  { %7 = vsyncpa [#allocation3], 0  ;;  %s343_s0 = inlined_call_operand.hbm [shape: f32[24,128], index: 0, kind: input, shape index: {}]   ;;  %s344_s1 = inlined_call_operand.hbm [shape: f32[8,128], index: 1, kind: input, shape index: {}]   ;;  %s345_s2 = inlined_call_operand.hbm [shape: f32[8,128], index: 2, kind: output, shape index: {}]  }
   0x1   :  { %8 = vsyncpa [#allocation6], 0 }
   0x2   :  { %9 = vsyncpa [#allocation4], 0  ;;  %s14_s11 = sshll.u32 %s343_s0, 4  ;;  %s288_s12 = smov [#allocation2]   ;;  %s15_s11 = int_to_ptr.hbm [resolvable:$true] %s14_s11 }
   0x3   :  { %s16_s13 = sshll.u32 %s288_s12, 4  ;;  %s28_s16 = sshll.u32 %s344_s1, 4  ;;  %s17_s13 = int_to_ptr.vmem [resolvable:$true] %s16_s13  ;;  %s29_s16 = int_to_ptr.hbm [resolvable:$true] %s28_s16 }
   0x4   :  { %s289_s17 = smov 128   ;;  %s290_s18 = smov 8  }
   0x5   :  { %22 = dma.hbm_to_vmem [thread:$0]  %s15_s11, 384, %s17_s13, [#allocation3], %s289_s17, %s289_s17, %s290_s18  }
   0x6   :  { %s291_s19 = smov [#allocation5]  }
   0x7   :  { %s30_s20 = sshll.u32 %s291_s19, 4  ;;  %s31_s20 = int_to_ptr.vmem [resolvable:$true] %s30_s20 }
   0x8   :  { %33 = dma.hbm_to_vmem [thread:$0]  %s29_s16, 128, %s31_s20, [#allocation6]  }
   0x9   :  { %282 = dma.done.wait [#allocation3], 384  }
   0xa   :  { %283 = vsyncadd [#allocation3], 4294966912 }
   0xb   :  { %284 = dma.done.wait [#allocation6], 128  }
   0xc   :  { %285 = vsyncadd [#allocation6], 4294967168  ;;  %v42_v0 = vld [vmem:[#allocation5] sm:$0xff]  ;;  %s292_s0 = smov 127   ;;  %s293_s21 = smov 1   ;;  %v43_v1 = vlaneseq }
   0xd   :  { %58 = vrot.lane.b32.xlu0 %v42_v0, %s292_s0  ;;  %v189_v5 = vld [vmem:[#allocation2] ss:$0 sm:$0xff]  ;;  %v192_v6 = vld [vmem:[#allocation2 + $0x3] ss:$0 sm:$0xff]  ;;  %v190_v8 = vld [vmem:[#allocation2 + $0x1] ss:$0 sm:$0xff] }
   0xe   :  { %v44_v2 = vand.u32 127, %v43_v1  ;;  %v193_v9 = vld [vmem:[#allocation2 + $0x4] ss:$0 sm:$0xff]  ;;  %v67_v11 = vmul.f32 %v189_v5, %v42_v0  ;;  %v78_v12 = vmul.f32 %v192_v6, %v42_v0  ;;  %v191_v14 = vld [vmem:[#allocation2 + $0x2] ss:$0 sm:$0xff]  ;;  %s294_s1 = smov [#allocation7]  }
   0xf   :  { %v194_v15 = vld [vmem:[#allocation2 + $0x5] ss:$0 sm:$0xff]  ;;  %v197_v26 = vld [vmem:[#allocation2 + $0x6] ss:$0 sm:$0xff]  ;;  %v198_v27 = vld [vmem:[#allocation2 + $0x7] ss:$0 sm:$0xff] }
  0x10   :  { %v49_v4 = vand.u32 1, %v44_v2  ;;  %v200_v28 = vld [vmem:[#allocation2 + $0xb] ss:$0 sm:$0xff]  ;;  %v201_v29 = vld [vmem:[#allocation2 + $0xc] ss:$0 sm:$0xff]  ;;  %s169_s22 = sshll.u32 %s294_s1, 4  ;;  %s170_s22 = int_to_ptr.vmem [resolvable:$true] %s169_s22 }
  0x11   :  { %v199_v31 = vld [vmem:[#allocation2 + $0x8] ss:$0 sm:$0xff]  ;;  %v202_v32 = vld [vmem:[#allocation2 + $0xd] ss:$0 sm:$0xff]  ;;  %v195_v35 = vld [vmem:[#allocation2 + $0x9] ss:$0 sm:$0xff] }
  0x12   :  { %vm318_vm0 = vcmp.eq.s32.totalorder %v49_v4, 0  ;;  %v196_v36 = vld [vmem:[#allocation2 + $0xe] ss:$0 sm:$0xff]  ;;  %v203_v50 = vld [vmem:[#allocation2 + $0xf] ss:$0 sm:$0xff]  ;;  %s171_s25 = sshll.u32 %s345_s2, 4  ;;  %s172_s25 = int_to_ptr.hbm [resolvable:$true] %s171_s25 }
  0x13   :  { %v205_v51 = vld [vmem:[#allocation2 + $0xa] ss:$0 sm:$0xff]  ;;  %v206_v58 = vld [vmem:[#allocation2 + $0x10] ss:$0 sm:$0xff]  ;;  %v207_v59 = vld [vmem:[#allocation2 + $0x11] ss:$0 sm:$0xff] }
  0x14   :  { %v204_v61 = vld [vmem:[#allocation2 + $0x12] ss:$0 sm:$0xff]  ;;  %v208_v4 = vld [vmem:[#allocation2 + $0x13] ss:$0 sm:$0xff] }
  0x15   :  { %60 = vrot.lane.b32.xlu0 %v42_v0, %s293_s21 }
  0x7f   :  { %v59_v3 = vpop.permute.xlu0 %58 }
  0x87   :  { %v61_v10 = vpop.permute.xlu0 %60 }
  0x88   :  { %v64_v13 = vsel %vm318_vm0, %v59_v3, %v61_v10 }
  0x89   :  { %v70_v16 = vmul.f32 %v190_v8, %v64_v13  ;;  %v81_v17 = vmul.f32 %v193_v9, %v64_v13 }
  0x8b   :  { %v71_v18 = vadd.f32 %v70_v16, %v67_v11  ;;  %v82_v19 = vadd.f32 %v81_v17, %v78_v12  ;;  %v209_v11 = vld [vmem:[#allocation2 + $0x14] ss:$0 sm:$0xff] }
  0x8d   :  { %v74_v20 = vadd.f32 %v191_v14, %v71_v18  ;;  %v85_v21 = vadd.f32 %v194_v15, %v82_v19 }
  0x8f   :  { %v75_v22 = vmax.f32 %v74_v20, 0.0  ;;  %v86_v23 = vmax.f32 %v85_v21, 0.0 }
  0x91   :  { %92 = vrot.lane.b32.xlu2 %v86_v23, %s292_s0  ;;  %87 = vrot.lane.b32.xlu1 %v75_v22, %s292_s0  ;;  %v99_v37 = vmul.f32 %v197_v26, %v75_v22  ;;  %v118_v39 = vmul.f32 %v200_v28, %v75_v22  ;;  %v106_v42 = vmul.f32 %v199_v31, %v86_v23 }
  0x92   :  { %v125_v43 = vmul.f32 %v202_v32, %v86_v23 }
  0x99   :  { %94 = vrot.lane.b32.xlu2 %v86_v23, %s293_s21  ;;  %89 = vrot.lane.b32.xlu1 %v75_v22, %s293_s21 }
  0xeb   :  { %v93_v24 = vpop.permute.xlu2 %92 }
  0xf3   :  { %v95_v30 = vpop.permute.xlu2 %94 }
  0xf4   :  { %v96_v41 = vsel %vm318_vm0, %v93_v24, %v95_v30 }
  0xf5   :  { %v110_v46 = vmul.f32 %v195_v35, %v96_v41  ;;  %v129_v47 = vmul.f32 %v196_v36, %v96_v41 }
 0x103   :  { %v88_v25 = vpop.permute.xlu1 %87 }
 0x10b   :  { %v90_v33 = vpop.permute.xlu1 %89 }
 0x10c   :  { %v91_v34 = vsel %vm318_vm0, %v88_v25, %v90_v33 }
 0x10d   :  { %v102_v38 = vmul.f32 %v198_v27, %v91_v34  ;;  %v121_v40 = vmul.f32 %v201_v29, %v91_v34 }
 0x10f   :  { %v103_v44 = vadd.f32 %v102_v38, %v99_v37  ;;  %v122_v45 = vadd.f32 %v121_v40, %v118_v39 }
 0x111   :  { %v107_v48 = vadd.f32 %v106_v42, %v103_v44  ;;  %v126_v49 = vadd.f32 %v125_v43, %v122_v45 }
 0x113   :  { %v130_v52 = vadd.f32 %v129_v47, %v126_v49  ;;  %v111_v53 = vadd.f32 %v110_v46, %v107_v48 }
 0x115   :  { %v133_v54 = vadd.f32 %v203_v50, %v130_v52  ;;  %v114_v55 = vadd.f32 %v205_v51, %v111_v53 }
 0x117   :  { %v134_v56 = vmax.f32 %v133_v54, 0.0  ;;  %v115_v57 = vmax.f32 %v114_v55, 0.0 }
 0x119   :  { %140 = vrot.lane.b32.xlu2 %v134_v56, %s292_s0  ;;  %137 = vrot.lane.b32.xlu1 %v115_v57, %s293_s21  ;;  %v147_v0 = vmul.f32 %v206_v58, %v115_v57  ;;  %v154_v2 = vmul.f32 %v204_v61, %v134_v56 }
 0x11a   :  { %135 = vrot.lane.b32.xlu0 %v115_v57, %s292_s0 }
 0x122   :  { %142 = vrot.lane.b32.xlu0 %v134_v56, %s293_s21 }
 0x173   :  { %v141_v6 = vpop.permute.xlu2 %140 }
 0x18b   :  { %v138_v60 = vpop.permute.xlu1 %137 }
 0x18c   :  { %v136_v62 = vpop.permute.xlu0 %135 }
 0x18d   :  { %v139_v63 = vsel %vm318_vm0, %v136_v62, %v138_v60 }
 0x18e   :  { %v150_v1 = vmul.f32 %v207_v59, %v139_v63 }
 0x190   :  { %v151_v3 = vadd.f32 %v150_v1, %v147_v0 }
 0x192   :  { %v155_v5 = vadd.f32 %v154_v2, %v151_v3 }
 0x194   :  { %v143_v8 = vpop.permute.xlu0 %142 }
 0x195   :  { %v144_v9 = vsel %vm318_vm0, %v141_v6, %v143_v8 }
 0x196   :  { %v158_v10 = vmul.f32 %v208_v4, %v144_v9 }
 0x198   :  { %v159_v12 = vadd.f32 %v158_v10, %v155_v5 }
 0x19a   :  { %v162_v13 = vadd.f32 %v209_v11, %v159_v12 }
 0x19c   :  { %163 = vst [vmem:[#allocation7] sm:$0xff] %v162_v13 }
 0x19d   :  { %174 = dma.vmem_to_hbm [thread:$0]  %s170_s22, 128, %s172_s25, [#allocation4]  }
 0x19e   :  { %286 = dma.done.wait [#allocation4], 128  }
 0x19f   :  { %287 = vsyncadd [#allocation4], 4294967168 }
 0x1a0   :  { %179 = vsyncpa [#allocation3], 1 }
 0x1a1   :  { %180 = vsyncpa [#allocation6], 1 }
 0x1a2   :  { %181 = vsyncpa [#allocation4], 1 }

</bundles_post_ra>
